<compile_context>
chip_gen: v6e
topology: v6e:2x2x1
jax: 0.10.0
libtpu: 0.0.40
codegen_flags: <defaults>
</compile_context>

<pallas_src>
import numpy as np
import jax
import jax.numpy as jnp
from jax.experimental import pallas as pl
from jax.experimental.pallas import tpu as pltpu

# ---------------- small shapes consistent with the module ----------------
BATCH = 2       # B
SEQ = 8         # T (input_length)
NUM_VERT = 16   # N (num_of_vertices)
NUM_FEAT = 16   # C (num_of_features)
NC = NUM_VERT * NUM_FEAT          # 256 lanes (multiple of 128)


def _s2t_kernel(x_ref, temp_ref, emb_ref, ds_ref, dt_ref, w_ref, b_ref, out_ref):
    x = x_ref[...]                                    # (B*T, N*C) f32; also the residual
    # position embedding + diag(adj_s) (lane bcast) * diag(adj_t) (row bcast)
    xs = (x + emb_ref[...]) * ds_ref[...] * dt_ref[...]

    # single fused GLU matmul: (B*T, N*C) x (N*C, 2*N*C), f32 in / f32 accumulate
    y = jnp.dot(xs, w_ref[...], preferred_element_type=jnp.float32) + b_ref[...]

    lhs = y[:, :NC]                                   # lane-aligned slices of one result
    rhs = y[:, NC:]
    sig = 1.0 / (1.0 + jnp.exp(-rhs))                 # exact sigmoid (EUP exp + f32 div)

    out_ref[...] = lhs * sig + x + temp_ref[...]      # lane-dense (last dim 256) store


def make_s2t_constants(params, B=BATCH, T=SEQ, N=NUM_VERT, C=NUM_FEAT):
    """Parameter-only constants, built ONCE and reused across calls."""
    f32 = jnp.float32

    # position embedding plane, rows = (b,t), lanes = (n,c)
    t_emb = params["temporal_emb"][0, :, 0, :].astype(f32)        # (T, C)
    s_emb = params["spatial_emb"][0, 0].astype(f32)               # (N, C)
    emb = t_emb[:, None, :] + s_emb[None, :, :]                   # (T, N, C)
    emb2d = jnp.tile(emb.reshape(T, N * C), (B, 1))               # (B*T, N*C)

    # block-diagonal lift of the shared (C, 2C) GLU weight -> (N*C, 2*N*C)
    W = params["weight"].astype(f32)                              # (C, 2C)
    eye_n = jnp.eye(N, dtype=f32)
    wbig = jnp.concatenate([jnp.kron(eye_n, W[:, :C]),
                            jnp.kron(eye_n, W[:, C:])], axis=1)   # (N*C, 2*N*C) f32

    b = params["bias"][0].astype(f32)                             # (2C,)
    bbig = jnp.concatenate([jnp.tile(b[:C], N),
                            jnp.tile(b[C:], N)]).reshape(1, 2 * N * C)

    return {"emb2d": emb2d, "wbig": wbig, "bbig": bbig}


def s2t_pallas(data, temp, adj_s, adj_t, consts):
    B, T, N, C = data.shape
    assert (B, T, N, C) == (BATCH, SEQ, NUM_VERT, NUM_FEAT)
    f32 = jnp.float32

    # ---- per-call glue: only reshapes + two tiny diagonal scales ----
    data2d = data.reshape(B * T, N * C).astype(f32)               # rows=(b,t), lanes=(n,c)
    temp2d = temp.reshape(B * T, N * C).astype(f32)

    # einsum 'nn,...'/'tt,...' with repeated labels == multiply by the diagonals
    ds_lane = jnp.repeat(jnp.diagonal(adj_s).astype(f32), C).reshape(1, N * C)   # (1, N*C)
    dt_row = jnp.tile(jnp.diagonal(adj_t).astype(f32), B).reshape(B * T, 1)      # (B*T, 1)

    # advisory cost so XLA can overlap this tiny custom call with surrounding HLO
    m, k, n2 = B * T, N * C, 2 * N * C
    bytes_accessed = 4 * (3 * m * k      # data, temp, emb
                          + k + m        # ds_lane, dt_row
                          + k * n2 + n2  # wbig, bbig
                          + m * k)       # output
    cost = pl.CostEstimate(flops=2 * m * k * n2,
                           transcendentals=m * k,
                           bytes_accessed=bytes_accessed)

    out2d = pl.pallas_call(
        _s2t_kernel,
        out_shape=jax.ShapeDtypeStruct((B * T, N * C), f32),
        in_specs=[pl.BlockSpec(memory_space=pltpu.MemorySpace.VMEM)] * 7,
        out_specs=pl.BlockSpec(memory_space=pltpu.MemorySpace.VMEM),
        cost_estimate=cost,
    )(data2d, temp2d, consts["emb2d"], ds_lane, dt_row, consts["wbig"], consts["bbig"])

    return out2d.reshape(B, T, N, C)


# ---------------- pure-JAX reference (mirrors the PyTorch forward) ----------------
def s2t_ref(data, temp, adj_s, adj_t, params):
    C = data.shape[-1]
    hp = jax.lax.Precision.HIGHEST
    d = data + params["temporal_emb"] + params["spatial_emb"]
    d = jnp.einsum('nn,btnc->btnc', adj_s, d)
    d = jnp.einsum('tt,btnc->btnc', adj_t, d)
    y = jnp.einsum('btnc,cd->btnd', d, params["weight"], precision=hp) + params["bias"]
    lhs, rhs = y[..., :C], y[..., C:]
    return lhs * jax.nn.sigmoid(rhs) + data + temp


if __name__ == "__main__":
    key = jax.random.PRNGKey(0)
    ks = jax.random.split(key, 8)
    B, T, N, C = BATCH, SEQ, NUM_VERT, NUM_FEAT

    # deterministic synthetic parameters (shapes follow the PyTorch __init__)
    params = {
        "temporal_emb": 0.01 * jax.random.normal(ks[0], (1, T, 1, C), jnp.float32),
        "spatial_emb": 0.01 * jax.random.normal(ks[1], (1, 1, N, C), jnp.float32),
        "weight": 0.1 * jax.random.normal(ks[2], (C, 2 * C), jnp.float32),
        "bias": 0.1 * jax.random.normal(ks[3], (1, 2 * C), jnp.float32),
    }
    data = jax.random.normal(ks[4], (B, T, N, C), jnp.float32)
    temp = jax.random.normal(ks[5], (B, T, N, C), jnp.float32)
    adj_s = jax.random.normal(ks[6], (N, N), jnp.float32)
    adj_t = jax.random.normal(ks[7], (T, T), jnp.float32)

    # constants are built ONCE, outside the per-call path
    consts = jax.tree_util.tree_map(jax.block_until_ready, make_s2t_constants(params))

    fwd = jax.jit(s2t_pallas)
    out = fwd(data, temp, adj_s, adj_t, consts)
    out = jax.block_until_ready(out)

    ref = s2t_ref(data, temp, adj_s, adj_t, params)
    assert out.shape == (B, T, N, C)
    np.testing.assert_allclose(np.asarray(out), np.asarray(ref), rtol=1e-2, atol=1e-2)
    print("KERNEL_OK")
</pallas_src>

<mosaic_0001>
module attributes {stable_mosaic.version = 11 : i64} {
  func.func @_s2t_kernel(%arg0: memref<16x256xf32, #tpu.memory_space<vmem>>, %arg1: memref<16x256xf32, #tpu.memory_space<vmem>>, %arg2: memref<16x256xf32, #tpu.memory_space<vmem>>, %arg3: memref<1x256xf32, #tpu.memory_space<vmem>>, %arg4: memref<16x1xf32, #tpu.memory_space<vmem>>, %arg5: memref<256x512xf32, #tpu.memory_space<vmem>>, %arg6: memref<1x512xf32, #tpu.memory_space<vmem>>, %arg7: memref<16x256xf32, #tpu.memory_space<vmem>>) attributes {dimension_semantics = [], scalar_prefetch = 0 : i64, scratch_operands = 0 : i64, tpu.core_type = #tpu.core_type<tc>} {
    %c0 = arith.constant 0 : index
    %c0_0 = arith.constant 0 : index
    %0 = vector.load %arg0[%c0, %c0_0] : memref<16x256xf32, #tpu.memory_space<vmem>>, vector<16x256xf32>
    %c0_1 = arith.constant 0 : index
    %c0_2 = arith.constant 0 : index
    %1 = vector.load %arg2[%c0_1, %c0_2] : memref<16x256xf32, #tpu.memory_space<vmem>>, vector<16x256xf32>
    %2 = arith.addf %0, %1 : vector<16x256xf32>
    %c0_3 = arith.constant 0 : index
    %c0_4 = arith.constant 0 : index
    %3 = vector.load %arg3[%c0_3, %c0_4] : memref<1x256xf32, #tpu.memory_space<vmem>>, vector<1x256xf32>
    %4 = vector.broadcast %3 : vector<1x256xf32> to vector<16x256xf32>
    %5 = arith.mulf %2, %4 : vector<16x256xf32>
    %c0_5 = arith.constant 0 : index
    %c0_6 = arith.constant 0 : index
    %6 = vector.load %arg4[%c0_5, %c0_6] : memref<16x1xf32, #tpu.memory_space<vmem>>, vector<16x1xf32>
    %7 = vector.broadcast %6 : vector<16x1xf32> to vector<16x256xf32>
    %8 = arith.mulf %5, %7 : vector<16x256xf32>
    %c0_7 = arith.constant 0 : index
    %c0_8 = arith.constant 0 : index
    %9 = vector.load %arg5[%c0_7, %c0_8] : memref<256x512xf32, #tpu.memory_space<vmem>>, vector<256x512xf32>
    %cst = arith.constant dense<0.000000e+00> : vector<16x512xf32>
    %10 = tpu.matmul %8, %9, %cst {dimension_numbers = #tpu.dot_dimension_numbers<[1], [0], [0], [1], [0, 0, 1, 1], [], []>} : vector<16x256xf32>, vector<256x512xf32>, vector<16x512xf32> -> vector<16x512xf32>
    %c0_9 = arith.constant 0 : index
    %c0_10 = arith.constant 0 : index
    %11 = vector.load %arg6[%c0_9, %c0_10] : memref<1x512xf32, #tpu.memory_space<vmem>>, vector<1x512xf32>
    %12 = vector.broadcast %11 : vector<1x512xf32> to vector<16x512xf32>
    %13 = arith.addf %10, %12 : vector<16x512xf32>
    %14 = vector.extract_strided_slice %13 {offsets = [0, 0], sizes = [16, 256], strides = [1, 1]} : vector<16x512xf32> to vector<16x256xf32>
    %15 = vector.extract_strided_slice %13 {offsets = [0, 256], sizes = [16, 256], strides = [1, 1]} : vector<16x512xf32> to vector<16x256xf32>
    %cst_11 = arith.constant 0.000000e+00 : f32
    %16 = vector.broadcast %cst_11 : f32 to vector<16x256xf32>
    %17 = arith.subf %16, %15 : vector<16x256xf32>
    %18 = math.exp %17 : vector<16x256xf32>
    %cst_12 = arith.constant 1.000000e+00 : f32
    %19 = vector.broadcast %cst_12 : f32 to vector<16x256xf32>
    %20 = arith.addf %19, %18 : vector<16x256xf32>
    %cst_13 = arith.constant 1.000000e+00 : f32
    %21 = vector.broadcast %cst_13 : f32 to vector<16x256xf32>
    %22 = arith.divf %21, %20 : vector<16x256xf32>
    %23 = arith.mulf %14, %22 : vector<16x256xf32>
    %24 = arith.addf %23, %0 : vector<16x256xf32>
    %c0_14 = arith.constant 0 : index
    %c0_15 = arith.constant 0 : index
    %25 = vector.load %arg1[%c0_14, %c0_15] : memref<16x256xf32, #tpu.memory_space<vmem>>, vector<16x256xf32>
    %26 = arith.addf %24, %25 : vector<16x256xf32>
    %c0_16 = arith.constant 0 : index
    %c0_17 = arith.constant 0 : index
    %27 = vector.load %arg7[%c0_16, %c0_17] : memref<16x256xf32, #tpu.memory_space<vmem>>, vector<16x256xf32>
    tpu.vector_store %arg7[%c0_16, %c0_17], %26 {strides = array<i32>} : memref<16x256xf32, #tpu.memory_space<vmem>>, vector<16x256xf32>,
    return
  }
}

</mosaic_0001>

<bundles_post_ra>
// kernel: tile.8
= control target key start
LH: loop header
LB: loop body
LE: loop exit
PB: predicated region body
PF: predicated region fallthrough
CT: control target
= control target key end

     0   :  { %s22_s0 = inlined_call_operand.vmem [shape: f32[8], index: 0, kind: input, shape index: {}]   ;;  %s23_s1 = inlined_call_operand.vmem [shape: f32[2,8], index: 1, kind: output, shape index: {}]  }
   0x1   :  { %v4_v0 = vld [vmem:[%s22_s0] ss:$0 sm:$0xff] }
   0x2   :  { %5 = vst [vmem:[%s23_s1] sm:$0x3] %v4_v0 }

// kernel: tile.0
= control target key start
LH: loop header
LB: loop body
LE: loop exit
PB: predicated region body
PF: predicated region fallthrough
CT: control target
= control target key end

     0   :  { %s67_s8 = smov 125   ;;  %vm8_vm0 = vcmask 7168   ;;  %s68_s11 = smov 126   ;;  %s118_s0 = inlined_call_operand.vmem [shape: f32[2,8], index: 0, kind: input, shape index: {}]   ;;  %s119_s1 = inlined_call_operand.vmem [shape: f32[16,1], index: 1, kind: output, shape index: {}]  }
   0x1   :  { %v5_v0 = vld [vmem:[%s118_s0] sm:$0x3]  ;;  %s66_s0 = smov 127   ;;  %s69_s12 = smov 124  }
   0x2   :  { %6 = vst [vmem:[#allocation0] sm:$0x3] %v5_v0  ;;  %s70_s13 = smov 123   ;;  %s71_s14 = smov 122  }
   0x3   :  { %s72_s15 = smov 121  }
   0x9   :  { %v10_v1 = vld [vmem:[#allocation0] sm:$0x3]  }
   0xa   :  { %v22_v2 = vld [vmem:[#allocation0] sm:$0x3]   ;;  %11 = vrot.lane.b32.xlu0 %v10_v1, %s66_s0 }
   0xb   :  { %23 = vrot.lane.b32.xlu1 %v22_v2, %s67_s8  ;;  %v16_v3 = vld [vmem:[#allocation0] sm:$0x3]  }
   0xc   :  { %v28_v4 = vld [vmem:[#allocation0] sm:$0x3]  }
   0xd   :  { %v7_v5 = vld [vmem:[#allocation0] sm:$0x3]  }
   0xe   :  { %9 = vst.msk [vmem:[%s119_s1] ss:$8 sm:$0x3] %vm8_vm0, %v7_v5   ;;  %17 = vrot.lane.b32.xlu0 %v16_v3, %s68_s11  ;;  %v34_v6 = vld [vmem:[#allocation0] sm:$0x3]  }
   0xf   :  { %29 = vrot.lane.b32.xlu1 %v28_v4, %s69_s12  ;;  %v40_v7 = vld [vmem:[#allocation0] sm:$0x3]  }
  0x10   :  { %v46_v8 = vld [vmem:[#allocation0] sm:$0x3]  }
  0x12   :  { %35 = vrot.lane.b32.xlu0 %v34_v6, %s70_s13 }
  0x13   :  { %41 = vrot.lane.b32.xlu1 %v40_v7, %s71_s14 }
  0x16   :  { %47 = vrot.lane.b32.xlu0 %v46_v8, %s72_s15 }
  0x7c   :  { %v12_v9 = vpop.permute.xlu0 %11  }
  0x7d   :  { %v24_v10 = vpop.permute.xlu1 %23   ;;  %52 = vst.msk [vmem:[%s119_s1 + $0x1] ss:$8 sm:$0x3] %vm8_vm0, %v12_v9  }
  0x7e   :  { %54 = vst.msk [vmem:[%s119_s1 + $0x3] ss:$8 sm:$0x3] %vm8_vm0, %v24_v10  }
  0x80   :  { %v18_v11 = vpop.permute.xlu0 %17  }
  0x81   :  { %v30_v12 = vpop.permute.xlu1 %29   ;;  %53 = vst.msk [vmem:[%s119_s1 + $0x2] ss:$8 sm:$0x3] %vm8_vm0, %v18_v11  }
  0x82   :  { %55 = vst.msk [vmem:[%s119_s1 + $0x4] ss:$8 sm:$0x3] %vm8_vm0, %v30_v12  }
  0x84   :  { %v36_v13 = vpop.permute.xlu0 %35  }
  0x85   :  { %v42_v14 = vpop.permute.xlu1 %41   ;;  %56 = vst.msk [vmem:[%s119_s1 + $0x5] ss:$8 sm:$0x3] %vm8_vm0, %v36_v13  }
  0x86   :  { %57 = vst.msk [vmem:[%s119_s1 + $0x6] ss:$8 sm:$0x3] %vm8_vm0, %v42_v14  }
  0x88   :  { %v48_v15 = vpop.permute.xlu0 %47  }
  0x89   :  { %58 = vst.msk [vmem:[%s119_s1 + $0x7] ss:$8 sm:$0x3] %vm8_vm0, %v48_v15  }

// kernel: s2t_pallas.1
= control target key start
LH: loop header
LB: loop body
LE: loop exit
PB: predicated region body
PF: predicated region fallthrough
CT: control target
= control target key end

     0   :  { %v440_v0 = vmov 0   ;;  %s955_s4 = inlined_call_operand.vmem [shape: f32[16,1], index: 4, kind: input, shape index: {}]   ;;  %s956_s5 = inlined_call_operand.vmem [shape: f32[256,512], index: 5, kind: input, shape index: {}]   ;;  %s957_s0 = inlined_call_operand.vmem [shape: f32[16,256], index: 0, kind: input, shape index: {}]   ;;  %s958_s2 = inlined_call_operand.vmem [shape: f32[16,256], index: 2, kind: input, shape index: {}]   ;;  %s959_s3 = inlined_call_operand.vmem [shape: f32[1,256], index: 3, kind: input, shape index: {}]   ;;  %s960_s6 = inlined_call_operand.vmem [shape: f32[1,512], index: 6, kind: input, shape index: {}]   ;;  %s961_s1 = inlined_call_operand.vmem [shape: f32[16,256], index: 1, kind: input, shape index: {}]   ;;  %s962_s7 = inlined_call_operand.vmem [shape: f32[16,256], index: 7, kind: output, shape index: {}]  }
   0x1   :  { %423 = vset.pattern.permute.xlu0 %v440_v0  ;;  %v54_v1 = vld [vmem:[%s955_s4] sm:$0xff]  ;;  %v55_v2 = vld [vmem:[%s955_s4 + $0x8] sm:$0xff]  ;;  %v133_v4 = vld [vmem:[%s956_s5 + $0x1f8] sm:$0xff] }
   0x2   :  { %v131_v3 = vld [vmem:[%s956_s5 + $0x1e8] sm:$0xff]  ;;  %58 = vperm.xlu0 %423, %v54_v1   ;;  %v130_v5 = vld [vmem:[%s956_s5 + $0x1e0] sm:$0xff]  ;;  %v132_v6 = vld [vmem:[%s956_s5 + $0x1f0] sm:$0xff]  ;;  %297 = vmatprep.subr.mxu1 %v133_v4 }
   0x3   :  { %220 = vmatprep.subr.mxu0 %v131_v3  ;;  %v127_v7 = vld [vmem:[%s956_s5 + $0x1c8] sm:$0xff]  ;;  %v129_v8 = vld [vmem:[%s956_s5 + $0x1d8] sm:$0xff]  ;;  %v126_v9 = vld [vmem:[%s956_s5 + $0x1c0] sm:$0xff]  ;;  %298 = vmatpush1.msra.mxu1 %v132_v6 }
   0x4   :  { %221 = vmatpush1.msra.mxu0 %v130_v5  ;;  %v128_v10 = vld [vmem:[%s956_s5 + $0x1d0] sm:$0xff]  ;;  %v123_v11 = vld [vmem:[%s956_s5 + $0x1a8] sm:$0xff]  ;;  %v125_v12 = vld [vmem:[%s956_s5 + $0x1b8] sm:$0xff]  ;;  %299 = vmatprep.subr.mxu1 %v129_v8 }
   0x5   :  { %222 = vmatprep.subr.mxu0 %v127_v7  ;;  %v122_v13 = vld [vmem:[%s956_s5 + $0x1a0] sm:$0xff]  ;;  %v124_v14 = vld [vmem:[%s956_s5 + $0x1b0] sm:$0xff]  ;;  %300 = vmatpush1.msra.mxu1 %v128_v10  ;;  %v119_v15 = vld [vmem:[%s956_s5 + $0x188] sm:$0xff] }
   0x6   :  { %223 = vmatpush1.msra.mxu0 %v126_v9  ;;  %63 = vperm.xlu0 %423, %v55_v2   ;;  %v121_v16 = vld [vmem:[%s956_s5 + $0x198] sm:$0xff]  ;;  %v118_v17 = vld [vmem:[%s956_s5 + $0x180] sm:$0xff]  ;;  %v120_v18 = vld [vmem:[%s956_s5 + $0x190] sm:$0xff] }
   0x7   :  { %224 = vmatprep.subr.mxu0 %v123_v11  ;;  %301 = vmatprep.subr.mxu1 %v125_v12  ;;  %v115_v19 = vld [vmem:[%s956_s5 + $0x168] sm:$0xff]  ;;  %v117_v20 = vld [vmem:[%s956_s5 + $0x178] sm:$0xff]  ;;  %v114_v21 = vld [vmem:[%s956_s5 + $0x160] sm:$0xff] }
   0x8   :  { %225 = vmatpush1.msra.mxu0 %v122_v13  ;;  %302 = vmatpush1.msra.mxu1 %v124_v14  ;;  %v116_v22 = vld [vmem:[%s956_s5 + $0x170] sm:$0xff]  ;;  %v111_v23 = vld [vmem:[%s956_s5 + $0x148] sm:$0xff]  ;;  %v113_v24 = vld [vmem:[%s956_s5 + $0x158] sm:$0xff] }
   0x9   :  { %226 = vmatprep.subr.mxu0 %v119_v15  ;;  %303 = vmatprep.subr.mxu1 %v121_v16  ;;  %v110_v25 = vld [vmem:[%s956_s5 + $0x140] sm:$0xff]  ;;  %v112_v26 = vld [vmem:[%s956_s5 + $0x150] sm:$0xff]  ;;  %v107_v27 = vld [vmem:[%s956_s5 + $0x128] sm:$0xff] }
   0xa   :  { %227 = vmatpush1.msra.mxu0 %v118_v17  ;;  %304 = vmatpush1.msra.mxu1 %v120_v18  ;;  %v109_v28 = vld [vmem:[%s956_s5 + $0x138] sm:$0xff]  ;;  %v106_v29 = vld [vmem:[%s956_s5 + $0x120] sm:$0xff]  ;;  %v108_v30 = vld [vmem:[%s956_s5 + $0x130] sm:$0xff] }
   0xb   :  { %228 = vmatprep.subr.mxu0 %v115_v19  ;;  %305 = vmatprep.subr.mxu1 %v117_v20  ;;  %v103_v31 = vld [vmem:[%s956_s5 + $0x108] sm:$0xff]  ;;  %v105_v32 = vld [vmem:[%s956_s5 + $0x118] sm:$0xff]  ;;  %v102_v33 = vld [vmem:[%s956_s5 + $0x100] sm:$0xff] }
   0xc   :  { %229 = vmatpush1.msra.mxu0 %v114_v21  ;;  %306 = vmatpush1.msra.mxu1 %v116_v22  ;;  %v104_v34 = vld [vmem:[%s956_s5 + $0x110] sm:$0xff]  ;;  %v99_v35 = vld [vmem:[%s956_s5 + $0xe8] sm:$0xff]  ;;  %v101_v36 = vld [vmem:[%s956_s5 + $0xf8] sm:$0xff] }
   0xd   :  { %230 = vmatprep.subr.mxu0 %v111_v23  ;;  %307 = vmatprep.subr.mxu1 %v113_v24  ;;  %v98_v37 = vld [vmem:[%s956_s5 + $0xe0] sm:$0xff]  ;;  %v100_v38 = vld [vmem:[%s956_s5 + $0xf0] sm:$0xff]  ;;  %v95_v39 = vld [vmem:[%s956_s5 + $0xc8] sm:$0xff] }
   0xe   :  { %231 = vmatpush1.msra.mxu0 %v110_v25  ;;  %308 = vmatpush1.msra.mxu1 %v112_v26  ;;  %v97_v40 = vld [vmem:[%s956_s5 + $0xd8] sm:$0xff]  ;;  %v94_v41 = vld [vmem:[%s956_s5 + $0xc0] sm:$0xff]  ;;  %v96_v42 = vld [vmem:[%s956_s5 + $0xd0] sm:$0xff] }
   0xf   :  { %232 = vmatprep.subr.mxu0 %v107_v27  ;;  %309 = vmatprep.subr.mxu1 %v109_v28  ;;  %v91_v43 = vld [vmem:[%s956_s5 + $0xa8] sm:$0xff]  ;;  %v93_v44 = vld [vmem:[%s956_s5 + $0xb8] sm:$0xff]  ;;  %v90_v45 = vld [vmem:[%s956_s5 + $0xa0] sm:$0xff] }
  0x10   :  { %233 = vmatpush1.msra.mxu0 %v106_v29  ;;  %310 = vmatpush1.msra.mxu1 %v108_v30  ;;  %v92_v46 = vld [vmem:[%s956_s5 + $0xb0] sm:$0xff]  ;;  %v87_v47 = vld [vmem:[%s956_s5 + $0x88] sm:$0xff]  ;;  %v89_v48 = vld [vmem:[%s956_s5 + $0x98] sm:$0xff] }
  0x11   :  { %234 = vmatprep.subr.mxu0 %v103_v31  ;;  %311 = vmatprep.subr.mxu1 %v105_v32  ;;  %v86_v49 = vld [vmem:[%s956_s5 + $0x80] sm:$0xff]  ;;  %v88_v50 = vld [vmem:[%s956_s5 + $0x90] sm:$0xff]  ;;  %v83_v51 = vld [vmem:[%s956_s5 + $0x68] sm:$0xff] }
  0x12   :  { %235 = vmatpush1.msra.mxu0 %v102_v33  ;;  %312 = vmatpush1.msra.mxu1 %v104_v34  ;;  %v85_v52 = vld [vmem:[%s956_s5 + $0x78] sm:$0xff]  ;;  %v82_v53 = vld [vmem:[%s956_s5 + $0x60] sm:$0xff]  ;;  %v84_v54 = vld [vmem:[%s956_s5 + $0x70] sm:$0xff] }
  0x13   :  { %236 = vmatprep.subr.mxu0 %v99_v35  ;;  %313 = vmatprep.subr.mxu1 %v101_v36  ;;  %v79_v55 = vld [vmem:[%s956_s5 + $0x48] sm:$0xff]  ;;  %v81_v56 = vld [vmem:[%s956_s5 + $0x58] sm:$0xff]  ;;  %v78_v57 = vld [vmem:[%s956_s5 + $0x40] sm:$0xff] }
  0x14   :  { %237 = vmatpush1.msra.mxu0 %v98_v37  ;;  %314 = vmatpush1.msra.mxu1 %v100_v38  ;;  %v80_v58 = vld [vmem:[%s956_s5 + $0x50] sm:$0xff]  ;;  %v75_v59 = vld [vmem:[%s956_s5 + $0x28] sm:$0xff]  ;;  %v77_v60 = vld [vmem:[%s956_s5 + $0x38] sm:$0xff] }
  0x15   :  { %238 = vmatprep.subr.mxu0 %v95_v39  ;;  %315 = vmatprep.subr.mxu1 %v97_v40  ;;  %v74_v61 = vld [vmem:[%s956_s5 + $0x20] sm:$0xff]  ;;  %v76_v62 = vld [vmem:[%s956_s5 + $0x30] sm:$0xff]  ;;  %v71_v63 = vld [vmem:[%s956_s5 + $0x8] sm:$0xff] }
  0x16   :  { %239 = vmatpush1.msra.mxu0 %v94_v41  ;;  %316 = vmatpush1.msra.mxu1 %v96_v42  ;;  %v73_v0 = vld [vmem:[%s956_s5 + $0x18] sm:$0xff]  ;;  %v70_v1 = vld [vmem:[%s956_s5] sm:$0xff]  ;;  %v72_v2 = vld [vmem:[%s956_s5 + $0x10] sm:$0xff] }
  0x17   :  { %240 = vmatprep.subr.mxu0 %v91_v43  ;;  %317 = vmatprep.subr.mxu1 %v93_v44  ;;  %v195_v3 = vld [vmem:[%s956_s5 + $0x3e8] sm:$0xff]  ;;  %v197_v4 = vld [vmem:[%s956_s5 + $0x3f8] sm:$0xff]  ;;  %v194_v5 = vld [vmem:[%s956_s5 + $0x3e0] sm:$0xff] }
  0x18   :  { %241 = vmatpush1.msra.mxu0 %v90_v45  ;;  %318 = vmatpush1.msra.mxu1 %v92_v46  ;;  %v196_v6 = vld [vmem:[%s956_s5 + $0x3f0] sm:$0xff]  ;;  %v191_v7 = vld [vmem:[%s956_s5 + $0x3c8] sm:$0xff]  ;;  %v193_v8 = vld [vmem:[%s956_s5 + $0x3d8] sm:$0xff] }
  0x19   :  { %242 = vmatprep.subr.mxu0 %v87_v47  ;;  %319 = vmatprep.subr.mxu1 %v89_v48  ;;  %v190_v9 = vld [vmem:[%s956_s5 + $0x3c0] sm:$0xff]  ;;  %v192_v10 = vld [vmem:[%s956_s5 + $0x3d0] sm:$0xff]  ;;  %v187_v11 = vld [vmem:[%s956_s5 + $0x3a8] sm:$0xff] }
  0x1a   :  { %243 = vmatpush1.msra.mxu0 %v86_v49  ;;  %320 = vmatpush1.msra.mxu1 %v88_v50  ;;  %v189_v12 = vld [vmem:[%s956_s5 + $0x3b8] sm:$0xff]  ;;  %v186_v13 = vld [vmem:[%s956_s5 + $0x3a0] sm:$0xff]  ;;  %v188_v14 = vld [vmem:[%s956_s5 + $0x3b0] sm:$0xff] }
  0x1b   :  { %244 = vmatprep.subr.mxu0 %v83_v51  ;;  %321 = vmatprep.subr.mxu1 %v85_v52  ;;  %v183_v15 = vld [vmem:[%s956_s5 + $0x388] sm:$0xff]  ;;  %v185_v16 = vld [vmem:[%s956_s5 + $0x398] sm:$0xff]  ;;  %v182_v17 = vld [vmem:[%s956_s5 + $0x380] sm:$0xff] }
  0x1c   :  { %245 = vmatpush1.msra.mxu0 %v82_v53  ;;  %322 = vmatpush1.msra.mxu1 %v84_v54  ;;  %v184_v18 = vld [vmem:[%s956_s5 + $0x390] sm:$0xff]  ;;  %v179_v19 = vld [vmem:[%s956_s5 + $0x368] sm:$0xff]  ;;  %v181_v20 = vld [vmem:[%s956_s5 + $0x378] sm:$0xff] }
  0x1d   :  { %246 = vmatprep.subr.mxu0 %v79_v55  ;;  %323 = vmatprep.subr.mxu1 %v81_v56  ;;  %v178_v21 = vld [vmem:[%s956_s5 + $0x360] sm:$0xff]  ;;  %v180_v22 = vld [vmem:[%s956_s5 + $0x370] sm:$0xff]  ;;  %v175_v23 = vld [vmem:[%s956_s5 + $0x348] sm:$0xff] }
  0x1e   :  { %247 = vmatpush1.msra.mxu0 %v78_v57  ;;  %324 = vmatpush1.msra.mxu1 %v80_v58  ;;  %v177_v24 = vld [vmem:[%s956_s5 + $0x358] sm:$0xff]  ;;  %v174_v25 = vld [vmem:[%s956_s5 + $0x340] sm:$0xff]  ;;  %v176_v26 = vld [vmem:[%s956_s5 + $0x350] sm:$0xff] }
  0x1f   :  { %248 = vmatprep.subr.mxu0 %v75_v59  ;;  %325 = vmatprep.subr.mxu1 %v77_v60  ;;  %v171_v27 = vld [vmem:[%s956_s5 + $0x328] sm:$0xff]  ;;  %v173_v28 = vld [vmem:[%s956_s5 + $0x338] sm:$0xff]  ;;  %v170_v29 = vld [vmem:[%s956_s5 + $0x320] sm:$0xff] }
  0x20   :  { %249 = vmatpush1.msra.mxu0 %v74_v61  ;;  %326 = vmatpush1.msra.mxu1 %v76_v62  ;;  %v172_v30 = vld [vmem:[%s956_s5 + $0x330] sm:$0xff]  ;;  %v167_v31 = vld [vmem:[%s956_s5 + $0x308] sm:$0xff]  ;;  %v169_v32 = vld [vmem:[%s956_s5 + $0x318] sm:$0xff] }
  0x21   :  { %250 = vmatprep.subr.mxu0 %v71_v63  ;;  %327 = vmatprep.subr.mxu1 %v73_v0  ;;  %v166_v33 = vld [vmem:[%s956_s5 + $0x300] sm:$0xff]  ;;  %v168_v34 = vld [vmem:[%s956_s5 + $0x310] sm:$0xff]  ;;  %v163_v35 = vld [vmem:[%s956_s5 + $0x2e8] sm:$0xff] }
  0x22   :  { %251 = vmatpush1.msra.mxu0 %v70_v1  ;;  %328 = vmatpush1.msra.mxu1 %v72_v2  ;;  %v165_v36 = vld [vmem:[%s956_s5 + $0x2f8] sm:$0xff]  ;;  %v162_v37 = vld [vmem:[%s956_s5 + $0x2e0] sm:$0xff]  ;;  %v164_v38 = vld [vmem:[%s956_s5 + $0x2f0] sm:$0xff] }
  0x23   :  { %252 = vmatprep.subr.mxu0 %v195_v3  ;;  %329 = vmatprep.subr.mxu1 %v197_v4  ;;  %v159_v39 = vld [vmem:[%s956_s5 + $0x2c8] sm:$0xff]  ;;  %v161_v40 = vld [vmem:[%s956_s5 + $0x2d8] sm:$0xff]  ;;  %v158_v41 = vld [vmem:[%s956_s5 + $0x2c0] sm:$0xff]  ;;  %v40_v3 = vlaneseq }
  0x24   :  { %253 = vmatpush2.msra.mxu0 %v194_v5  ;;  %330 = vmatpush2.msra.mxu1 %v196_v6  ;;  %v160_v42 = vld [vmem:[%s956_s5 + $0x2d0] sm:$0xff]  ;;  %v155_v43 = vld [vmem:[%s956_s5 + $0x2a8] sm:$0xff]  ;;  %v157_v44 = vld [vmem:[%s956_s5 + $0x2b8] sm:$0xff] }
  0x25   :  { %254 = vmatprep.subr.mxu0 %v191_v7  ;;  %331 = vmatprep.subr.mxu1 %v193_v8  ;;  %v154_v45 = vld [vmem:[%s956_s5 + $0x2a0] sm:$0xff]  ;;  %v156_v46 = vld [vmem:[%s956_s5 + $0x2b0] sm:$0xff]  ;;  %v151_v47 = vld [vmem:[%s956_s5 + $0x288] sm:$0xff]  ;;  %v871_v4 = vshrl.u32 %v40_v3, 7 }
  0x26   :  { %255 = vmatpush2.msra.mxu0 %v190_v9  ;;  %332 = vmatpush2.msra.mxu1 %v192_v10  ;;  %v153_v48 = vld [vmem:[%s956_s5 + $0x298] sm:$0xff]  ;;  %v150_v49 = vld [vmem:[%s956_s5 + $0x280] sm:$0xff]  ;;  %v152_v50 = vld [vmem:[%s956_s5 + $0x290] sm:$0xff] }
  0x27   :  { %256 = vmatprep.subr.mxu0 %v187_v11  ;;  %333 = vmatprep.subr.mxu1 %v189_v12  ;;  %v147_v51 = vld [vmem:[%s956_s5 + $0x268] sm:$0xff]  ;;  %v149_v52 = vld [vmem:[%s956_s5 + $0x278] sm:$0xff]  ;;  %v146_v53 = vld [vmem:[%s956_s5 + $0x260] sm:$0xff]  ;;  %v42_v5 = vsub.s32 0, %v871_v4  ;;  %v46_v8 = vsub.s32 1, %v871_v4 }
  0x28   :  { %257 = vmatpush2.msra.mxu0 %v186_v13  ;;  %334 = vmatpush2.msra.mxu1 %v188_v14  ;;  %v148_v54 = vld [vmem:[%s956_s5 + $0x270] sm:$0xff]  ;;  %v143_v55 = vld [vmem:[%s956_s5 + $0x248] sm:$0xff]  ;;  %v145_v56 = vld [vmem:[%s956_s5 + $0x258] sm:$0xff] }
  0x29   :  { %258 = vmatprep.subr.mxu0 %v183_v15  ;;  %335 = vmatprep.subr.mxu1 %v185_v16  ;;  %v142_v57 = vld [vmem:[%s956_s5 + $0x240] sm:$0xff]  ;;  %v144_v58 = vld [vmem:[%s956_s5 + $0x250] sm:$0xff]  ;;  %v139_v59 = vld [vmem:[%s956_s5 + $0x228] sm:$0xff] }
  0x2a   :  { %259 = vmatpush2.msra.mxu0 %v182_v17  ;;  %336 = vmatpush2.msra.mxu1 %v184_v18  ;;  %v141_v60 = vld [vmem:[%s956_s5 + $0x238] sm:$0xff]  ;;  %v138_v61 = vld [vmem:[%s956_s5 + $0x220] sm:$0xff]  ;;  %v140_v62 = vld [vmem:[%s956_s5 + $0x230] sm:$0xff] }
  0x2b   :  { %260 = vmatprep.subr.mxu0 %v179_v19  ;;  %337 = vmatprep.subr.mxu1 %v181_v20  ;;  %v135_v63 = vld [vmem:[%s956_s5 + $0x208] sm:$0xff]  ;;  %v137_v0 = vld [vmem:[%s956_s5 + $0x218] sm:$0xff]  ;;  %v134_v1 = vld [vmem:[%s956_s5 + $0x200] sm:$0xff] }
  0x2c   :  { %261 = vmatpush2.msra.mxu0 %v178_v21  ;;  %338 = vmatpush2.msra.mxu1 %v180_v22  ;;  %v136_v2 = vld [vmem:[%s956_s5 + $0x210] sm:$0xff]  ;;  %v877_v6 = vld [vmem:[%s957_s0] sm:$0xff]  ;;  %v889_v10 = vld [vmem:[%s957_s0 + $0x8] sm:$0xff] }
  0x2d   :  { %262 = vmatprep.subr.mxu0 %v175_v23  ;;  %339 = vmatprep.subr.mxu1 %v177_v24  ;;  %v30_v7 = vld [vmem:[%s958_s2] sm:$0xff]  ;;  %v31_v11 = vld [vmem:[%s958_s2 + $0x8] sm:$0xff]  ;;  %v903_v16 = vld [vmem:[%s957_s0 + $0x10] sm:$0xff] }
  0x2e   :  { %263 = vmatpush2.msra.mxu0 %v174_v25  ;;  %340 = vmatpush2.msra.mxu1 %v176_v26  ;;  %v38_v9 = vld [vmem:[%s959_s3] sm:$0x3]  ;;  %v34_v12 = vadd.f32 %v30_v7, %v877_v6  ;;  %v35_v14 = vadd.f32 %v31_v11, %v889_v10  ;;  %v908_v17 = vld [vmem:[%s957_s0 + $0x18] sm:$0xff]  ;;  %v32_v18 = vld [vmem:[%s958_s2 + $0x10] sm:$0xff] }
  0x2f   :  { %264 = vmatprep.subr.mxu0 %v171_v27  ;;  %341 = vmatprep.subr.mxu1 %v173_v28  ;;  %v43_v13 = vrot.slane %v38_v9, %v42_v5  ;;  %v47_v15 = vrot.slane %v38_v9, %v46_v8  ;;  %v33_v19 = vld [vmem:[%s958_s2 + $0x18] sm:$0xff]  ;;  %v36_v22 = vadd.f32 %v32_v18, %v903_v16 }
  0x30   :  { %265 = vmatpush2.msra.mxu0 %v170_v29  ;;  %342 = vmatpush2.msra.mxu1 %v172_v30  ;;  %v37_v23 = vadd.f32 %v33_v19, %v908_v17 }
  0x31   :  { %266 = vmatprep.subr.mxu0 %v167_v31  ;;  %343 = vmatprep.subr.mxu1 %v169_v32  ;;  %v50_v20 = vmul.f32 %v43_v13, %v34_v12  ;;  %v51_v21 = vmul.f32 %v47_v15, %v35_v14  ;;  %v52_v27 = vmul.f32 %v43_v13, %v36_v22  ;;  %v210_v32 = vsub.s32 2, %v871_v4  ;;  %v406_v12 = vld [vmem:[%s961_s1] sm:$0xff] }
  0x32   :  { %267 = vmatpush2.msra.mxu0 %v166_v33  ;;  %344 = vmatpush2.msra.mxu1 %v168_v34  ;;  %v53_v28 = vmul.f32 %v47_v15, %v37_v23  ;;  %v198_v33 = vld [vmem:[%s960_s6] sm:$0xf]  ;;  %v214_v34 = vsub.s32 3, %v871_v4  ;;  %v407_v4 = vld [vmem:[%s961_s1 + $0x8] sm:$0xff] }
  0x33   :  { %268 = vmatprep.subr.mxu0 %v163_v35  ;;  %345 = vmatprep.subr.mxu1 %v165_v36  ;;  %v211_v35 = vrot.slane %v198_v33, %v210_v32 }
  0x34   :  { %269 = vmatpush2.msra.mxu0 %v162_v37  ;;  %346 = vmatpush2.msra.mxu1 %v164_v38  ;;  %v215_v36 = vrot.slane %v198_v33, %v214_v34 }
  0x35   :  { %270 = vmatprep.subr.mxu0 %v159_v39  ;;  %347 = vmatprep.subr.mxu1 %v161_v40 }
  0x36   :  { %271 = vmatpush2.msra.mxu0 %v158_v41  ;;  %348 = vmatpush2.msra.mxu1 %v160_v42 }
  0x37   :  { %272 = vmatprep.subr.mxu0 %v155_v43  ;;  %349 = vmatprep.subr.mxu1 %v157_v44 }
  0x38   :  { %273 = vmatpush2.msra.mxu0 %v154_v45  ;;  %350 = vmatpush2.msra.mxu1 %v156_v46 }
  0x39   :  { %274 = vmatprep.subr.mxu0 %v151_v47  ;;  %351 = vmatprep.subr.mxu1 %v153_v48 }
  0x3a   :  { %275 = vmatpush2.msra.mxu0 %v150_v49  ;;  %352 = vmatpush2.msra.mxu1 %v152_v50 }
  0x3b   :  { %276 = vmatprep.subr.mxu0 %v147_v51  ;;  %353 = vmatprep.subr.mxu1 %v149_v52 }
  0x3c   :  { %277 = vmatpush2.msra.mxu0 %v146_v53  ;;  %354 = vmatpush2.msra.mxu1 %v148_v54 }
  0x3d   :  { %278 = vmatprep.subr.mxu0 %v143_v55  ;;  %355 = vmatprep.subr.mxu1 %v145_v56 }
  0x3e   :  { %279 = vmatpush2.msra.mxu0 %v142_v57  ;;  %356 = vmatpush2.msra.mxu1 %v144_v58 }
  0x3f   :  { %280 = vmatprep.subr.mxu0 %v139_v59  ;;  %357 = vmatprep.subr.mxu1 %v141_v60 }
  0x40   :  { %281 = vmatpush2.msra.mxu0 %v138_v61  ;;  %358 = vmatpush2.msra.mxu1 %v140_v62  ;;  %v203_v62 = vrot.slane %v198_v33, %v42_v5 }
  0x41   :  { %282 = vmatprep.subr.mxu0 %v135_v63  ;;  %359 = vmatprep.subr.mxu1 %v137_v0  ;;  %v207_v0 = vrot.slane %v198_v33, %v46_v8 }
  0x42   :  { %283 = vmatpush2.msra.mxu0 %v134_v1  ;;  %360 = vmatpush2.msra.mxu1 %v136_v2 }
  0x7d   :  { %v59_v24 = vpop.permute.xlu0 %58 }
  0x7e   :  { %v66_v25 = vmul.f32 %v59_v24, %v50_v20  ;;  %v67_v26 = vmul.f32 %v59_v24, %v51_v21  ;;  %v408_v21 = vld [vmem:[%s961_s1 + $0x10] sm:$0xff] }
  0x80   :  { %284 = vmatprep.mubr.f32.mxu0 %v67_v26  ;;  %361 = vmatprep.mubr.f32.mxu1 %v67_v26  ;;  %v409_v26 = vld [vmem:[%s961_s1 + $0x18] sm:$0xff] }
  0x81   :  { %v64_v29 = vpop.permute.xlu0 %63  ;;  %285 = vmatmul.mubr.f32.vlgmr.msra.gmra.mxu0 %v66_v25  ;;  %362 = vmatmul.mubr.f32.vlgmr.msra.gmra.mxu1 %v66_v25 }
  0x82   :  { %v68_v30 = vmul.f32 %v64_v29, %v52_v27  ;;  %v69_v31 = vmul.f32 %v64_v29, %v53_v28 }
  0x84   :  { %290 = vmatprep.mubr.f32.mxu0 %v69_v31  ;;  %367 = vmatprep.mubr.f32.mxu1 %v69_v31 }
  0x85   :  { %291 = vmatmul.mubr.f32.gmra.mxu0 %v68_v30  ;;  %368 = vmatmul.mubr.f32.gmra.mxu1 %v68_v30 }
 0x141   :  { %v363_v37 = vpop.f32.mrf.mxu1  ;;  %v286_v60 = vpop.f32.mrf.mxu0 }
 0x142   :  { %v364_v38 = vadd.f32 %v363_v37, %v211_v35  ;;  %v287_v1 = vadd.f32 %v286_v60, %v203_v62 }
 0x143   :  { %v365_v39 = vpop.f32.mrf.mxu1  ;;  %v288_v63 = vpop.f32.mrf.mxu0 }
 0x144   :  { %v374_v40 = vsub.f32 0.0, %v364_v38  ;;  %v366_v41 = vadd.f32 %v365_v39, %v215_v36  ;;  %v289_v9 = vadd.f32 %v288_v63, %v207_v0 }
 0x145   :  { %v369_v42 = vpop.f32.mrf.mxu1  ;;  %v292_v2 = vpop.f32.mrf.mxu0 }
 0x146   :  { %v378_v43 = vmul.f32 1.442695, %v374_v40  ;;  %v375_v44 = vsub.f32 0.0, %v366_v41  ;;  %v370_v45 = vadd.f32 %v369_v42, %v211_v35  ;;  %v293_v15 = vadd.f32 %v292_v2, %v203_v62 }
 0x147   :  { %v371_v46 = vpop.f32.mrf.mxu1  ;;  %v294_v18 = vpop.f32.mrf.mxu0 }
 0x148   :  { %424 = vpow2.f32 %v378_v43  ;;  %v380_v47 = vmul.f32 1.442695, %v375_v44  ;;  %v376_v48 = vsub.f32 0.0, %v370_v45  ;;  %v372_v49 = vadd.f32 %v371_v46, %v215_v36 }
 0x149   :  { %v295_v22 = vadd.f32 %v294_v18, %v207_v0 }
 0x14a   :  { %426 = vpow2.f32 %v380_v47  ;;  %v382_v50 = vmul.f32 1.442695, %v376_v48  ;;  %v377_v51 = vsub.f32 0.0, %v372_v49 }
 0x14c   :  { %428 = vpow2.f32 %v382_v50  ;;  %v384_v52 = vmul.f32 1.442695, %v377_v51 }
 0x14e   :  { %430 = vpow2.f32 %v384_v52 }
 0x155   :  { %v425_v53 = vpop.eup %424 }
 0x156   :  { %v386_v54 = vadd.f32 1.0, %v425_v53 }
 0x157   :  { %v427_v55 = vpop.eup %426 }
 0x158   :  { %432 = vrcp.f32 %v386_v54  ;;  %v387_v56 = vadd.f32 1.0, %v427_v55 }
 0x159   :  { %v429_v57 = vpop.eup %428 }
 0x15a   :  { %434 = vrcp.f32 %v387_v56  ;;  %v388_v58 = vadd.f32 1.0, %v429_v57 }
 0x15b   :  { %v431_v59 = vpop.eup %430 }
 0x15c   :  { %436 = vrcp.f32 %v388_v58  ;;  %v389_v61 = vadd.f32 1.0, %v431_v59 }
 0x15e   :  { %438 = vrcp.f32 %v389_v61 }
 0x165   :  { %v433_v3 = vpop.eup %432 }
 0x166   :  { %v398_v7 = vmul.f32 %v433_v3, %v287_v1 }
 0x167   :  { %v435_v11 = vpop.eup %434 }
 0x168   :  { %v402_v13 = vadd.f32 %v398_v7, %v877_v6  ;;  %v399_v14 = vmul.f32 %v435_v11, %v289_v9 }
 0x169   :  { %v437_v5 = vpop.eup %436 }
 0x16a   :  { %v410_v8 = vadd.f32 %v406_v12, %v402_v13  ;;  %v403_v19 = vadd.f32 %v399_v14, %v889_v10  ;;  %v400_v20 = vmul.f32 %v437_v5, %v293_v15 }
 0x16b   :  { %v439_v23 = vpop.eup %438 }
 0x16c   :  { %414 = vst [vmem:[%s962_s7] sm:$0xff] %v410_v8  ;;  %v411_v6 = vadd.f32 %v407_v4, %v403_v19  ;;  %v404_v24 = vadd.f32 %v400_v20, %v903_v16  ;;  %v401_v25 = vmul.f32 %v439_v23, %v295_v22 }
 0x16e   :  { %415 = vst [vmem:[%s962_s7 + $0x8] sm:$0xff] %v411_v6  ;;  %v412_v10 = vadd.f32 %v408_v21, %v404_v24  ;;  %v405_v27 = vadd.f32 %v401_v25, %v908_v17 }
 0x170   :  { %416 = vst [vmem:[%s962_s7 + $0x10] sm:$0xff] %v412_v10  ;;  %v413_v28 = vadd.f32 %v409_v26, %v405_v27 }
 0x172   :  { %417 = vst [vmem:[%s962_s7 + $0x18] sm:$0xff] %v413_v28 }

</bundles_post_ra>
